<compile_context>
chip_gen: v7x
topology: tpu7x:2x2x1
jax: 0.10.0
libtpu: 0.0.40
codegen_flags: <defaults>
</compile_context>

<pallas_src>
import jax
import jax.numpy as jnp
from jax.experimental import pallas as pl
from jax.experimental.pallas import tpu as pltpu


def _copy_kernel(x_ref, o_ref):
    # Element-wise copy of the current VMEM tile (full, lane-dense vregs).
    o_ref[...] = x_ref[...]


_LANES = 512                            # lane-dense width, multiple of 128
_TARGET_BLOCK_BYTES = 2 * 1024 * 1024   # ~2 MiB/block; x4 buffers ~= 8 MiB resident


@jax.jit
def _pallas_identity(x):
    """Identity copy routed through a tiled Pallas TPU kernel."""
    orig_shape = x.shape
    dtype = x.dtype
    total = int(x.size)
    if total == 0:
        return x

    itemsize = jnp.dtype(dtype).itemsize
    flat = x.reshape(-1)

    # Lane-dense 2-D view: cols is a large multiple of 128 (or the whole array
    # if it is tiny). Pad the flat view up to a whole number of rows.
    cols = _LANES if total >= _LANES else total
    rows = -(-total // cols)
    padded = rows * cols
    if padded != total:
        flat = jnp.pad(flat, (0, padded - total))
    x2 = flat.reshape(rows, cols)

    # Block sizing by bytes: ~2 MiB per block, sublane-aligned (multiple of 8).
    block_rows = max(8, (_TARGET_BLOCK_BYTES // (cols * itemsize)) // 8 * 8)
    if block_rows >= rows:
        if rows >= 16:
            # Keep at least 2 grid steps so v7x's two TensorCores can split
            # the 'parallel' axis; stay a multiple of 8 sublanes.
            block_rows = ((rows + 1) // 2 + 7) // 8 * 8
        else:
            block_rows = rows  # single full block (tiny input)

    grid = (pl.cdiv(rows, block_rows),)

    out2 = pl.pallas_call(
        _copy_kernel,
        out_shape=jax.ShapeDtypeStruct((rows, cols), dtype),
        grid_spec=pltpu.PrefetchScalarGridSpec(
            num_scalar_prefetch=0,
            grid=grid,
            in_specs=[pl.BlockSpec((block_rows, cols), lambda i: (i, 0))],
            out_specs=pl.BlockSpec((block_rows, cols), lambda i: (i, 0)),
        ),
        input_output_aliases={0: 0},
        compiler_params=pltpu.CompilerParams(
            dimension_semantics=("parallel",),
            vmem_limit_bytes=32 * 1024 * 1024,
        ),
    )(x2)

    out_flat = out2.reshape(-1)
    if padded != total:
        out_flat = out_flat[:total]
    return out_flat.reshape(orig_shape)


def mynn_forward(x, *, materialize=False):
    """Forward pass of MyNN (identity).

    By default the identity is short-circuited (returns `x`; zero HBM traffic,
    matching the module semantics exactly). Pass `materialize=True` to route
    the data through the Pallas copy kernel instead.
    """
    if not materialize:
        return x
    return _pallas_identity(x)


def num_flat_features(x):
    """Number of features when the spatial input x is flattened to 1-D."""
    num_features = 1
    for s in x.shape[1:]:
        num_features *= s
    return num_features


if __name__ == "__main__":
    key = jax.random.PRNGKey(0)
    # NCHW input: batch=2, channels=4, spatial=16x16.
    x = jax.random.normal(key, (2, 4, 16, 16), dtype=jnp.float32)

    # Short-circuit path (the "real" forward): no kernel, no copy.
    y_fast = mynn_forward(x)
    assert y_fast is x

    # Kernel path: run the Pallas copy once and verify it.
    y = mynn_forward(x, materialize=True)
    y = jax.block_until_ready(y)

    assert y.shape == x.shape and y.dtype == x.dtype
    assert bool(jnp.all(y == x))
    assert num_flat_features(x) == 4 * 16 * 16

    print("KERNEL_OK")
</pallas_src>

<mosaic_0001>
module attributes {stable_mosaic.version = 11 : i64} {
  func.func @_copy_kernel(%arg0: i32, %arg1: memref<4x512xf32, #tpu.memory_space<vmem>>, %arg2: memref<4x512xf32, #tpu.memory_space<vmem>>) attributes {dimension_semantics = [#tpu.dimension_semantics<parallel>], iteration_bounds = array<i64: 1>, scalar_prefetch = 0 : i64, scratch_operands = 0 : i64, tpu.core_type = #tpu.core_type<tc>, window_params = [{transform_indices = @transform_0, window_bounds = array<i64: 4, 512>}, {transform_indices = @transform_1, window_bounds = array<i64: 4, 512>}]} {
    %c0 = arith.constant 0 : index
    %c0_0 = arith.constant 0 : index
    %0 = vector.load %arg1[%c0, %c0_0] : memref<4x512xf32, #tpu.memory_space<vmem>>, vector<4x512xf32>
    %c0_1 = arith.constant 0 : index
    %c0_2 = arith.constant 0 : index
    %1 = vector.load %arg2[%c0_1, %c0_2] : memref<4x512xf32, #tpu.memory_space<vmem>>, vector<4x512xf32>
    tpu.vector_store %arg2[%c0_1, %c0_2], %0 {strides = array<i32>} : memref<4x512xf32, #tpu.memory_space<vmem>>, vector<4x512xf32>,
    return
  }
  func.func @transform_0(%arg0: i32) -> (i32, i32) {
    %c0_i32 = arith.constant 0 : i32
    %c0_i32_0 = arith.constant 0 : i32
    return %arg0, %c0_i32 : i32, i32
  }
  func.func @transform_1(%arg0: i32) -> (i32, i32) {
    %c0_i32 = arith.constant 0 : i32
    %c0_i32_0 = arith.constant 0 : i32
    return %arg0, %c0_i32 : i32, i32
  }
}

</mosaic_0001>

<bundles_post_ra>
// kernel: _pallas_identity.1
= control target key start
LH: loop header
LB: loop body
LE: loop exit
PB: predicated region body
PF: predicated region fallthrough
CT: control target
= control target key end

     0   :  { %s38_s0 = inlined_call_operand.vmem [shape: f32[4,512], index: 0, kind: input, shape index: {}, may-alias: {0,1}]   ;;  %s39_s1 = inlined_call_operand.vmem [shape: f32[4,512], index: 1, kind: output, shape index: {}, may-alias: {0,1}]  }
   0x1   :  { %v8_v0 = vld [vmem:[%s38_s0] sm:$0xff]  ;;  %v9_v1 = vld [vmem:[%s38_s0 + $0x8] sm:$0xff] }
   0x2   :  { %10 = vst [vmem:[%s39_s1] sm:$0xff] %v8_v0  ;;  %11 = vst [vmem:[%s39_s1 + $0x8] sm:$0xff] %v9_v1 }

</bundles_post_ra>
